<compile_context>
chip_gen: v7x
topology: tpu7x:2x2x1
jax: 0.10.0
libtpu: 0.0.40
codegen_flags: <defaults>
</compile_context>

<pallas_src>
import functools

import jax
import jax.numpy as jnp
from jax.experimental import pallas as pl
from jax.experimental.pallas import tpu as pltpu

BANDWIDTH_MULTIPLIERS = (0.5, 1.0, 5.0, 10.0, 20.0, 40.0)


def _rbf_kernel(xi_ref, xj_ref, ni_ref, nj_ref, o_ref, *, c1, c5, c40):
    """One (tile x tile) block of the kernel matrix.

    xi_ref : VMEM (tile, Dp)   rows for block row bi
    xj_ref : VMEM (tile, Dp)   rows for block col bj
    ni_ref : VMEM (tile, 1)    ||x_i||^2 for block bi
    nj_ref : VMEM (1, tile)    ||x_j||^2 for block bj
    o_ref  : VMEM (tile, tile) -> out[bi, bj]
    """
    xi = xi_ref[...]                                     # (tile, Dp) f32
    xj = xj_ref[...]                                     # (tile, Dp) f32

    # Gram block on the MXU; contract last dims of both -> no transpose of xj.
    dots = jax.lax.dot_general(
        xi, xj, (((1,), (1,)), ((), ())),
        preferred_element_type=jnp.float32)              # (tile, tile)

    # ||xi||^2 + ||xj||^2 - 2 xi.xj, clamped (expansion can go slightly < 0).
    d2 = jnp.maximum(ni_ref[...] + nj_ref[...] - 2.0 * dots, 0.0)

    # Three EUP exps; the remaining three bandwidth terms come from power
    # chains on the VPU (which has slack):
    #   m=0.5 : c = 4*c1   -> t^4
    #   m=20  : c = 4*c40  -> u^4
    #   m=10  : c = 16*c40 -> u^16
    t = jnp.exp(d2 * jnp.float32(c1))                    # m = 1
    v = jnp.exp(d2 * jnp.float32(c5))                    # m = 5
    u = jnp.exp(d2 * jnp.float32(c40))                   # m = 40

    t2 = t * t
    t4 = t2 * t2                                         # m = 0.5
    u2 = u * u
    u4 = u2 * u2                                         # m = 20
    u8 = u4 * u4
    u16 = u8 * u8                                        # m = 10

    acc = (t + t4) + (v + u16) + (u4 + u)

    bi = pl.program_id(0)
    bj = pl.program_id(1)

    @pl.when(bi == bj)
    def _():
        # Diagonal tile only: K[i,i] - 6 == exp(0)*6 - 6 == 0 exactly.
        row = jax.lax.broadcasted_iota(jnp.int32, acc.shape, 0)
        col = jax.lax.broadcasted_iota(jnp.int32, acc.shape, 1)
        o_ref[...] = jnp.where(row == col, jnp.float32(0.0), acc)

    @pl.when(bi != bj)
    def _():
        o_ref[...] = acc


def rbf(X, bandwidth=None, *, tile=128):
    """Pallas-TPU equivalent of RBF.forward(X). X: (N, D) float32 -> (N, N)."""
    X = jnp.asarray(X, jnp.float32)
    N, D = X.shape
    bw = 1.0 if bandwidth is None else float(bandwidth)

    # Pad rows to a multiple of the tile and features to a multiple of 128.
    # Zero padding changes neither norms nor dot products; padded rows are
    # sliced away at the end.
    n_pad = pl.cdiv(N, tile) * tile
    d_pad = pl.cdiv(D, 128) * 128
    Xp = jnp.pad(X, ((0, n_pad - N), (0, d_pad - D)))

    # Row norms precomputed once, in both broadcast layouts.
    nsq_col = jnp.sum(Xp * Xp, axis=1, keepdims=True)    # (n_pad, 1)
    nsq_row = nsq_col.reshape(1, n_pad)                  # (1, n_pad)

    nb = n_pad // tile

    # Folded exponent coefficients: exp(-0.5 * d2 / (bw*m)^2) = exp(d2 * c_m).
    c1 = -0.5 / (bw * 1.0) ** 2
    c5 = -0.5 / (bw * 5.0) ** 2
    c40 = -0.5 / (bw * 40.0) ** 2

    kernel = functools.partial(_rbf_kernel, c1=c1, c5=c5, c40=c40)

    out = pl.pallas_call(
        kernel,
        out_shape=jax.ShapeDtypeStruct((n_pad, n_pad), jnp.float32),
        grid=(nb, nb),
        in_specs=[
            pl.BlockSpec((tile, d_pad), lambda i, j: (i, 0)),
            pl.BlockSpec((tile, d_pad), lambda i, j: (j, 0)),
            pl.BlockSpec((tile, 1), lambda i, j: (i, 0)),
            pl.BlockSpec((1, tile), lambda i, j: (0, j)),
        ],
        out_specs=pl.BlockSpec((tile, tile), lambda i, j: (i, j)),
        compiler_params=pltpu.CompilerParams(
            dimension_semantics=("parallel", "parallel")),
    )(Xp, Xp, nsq_col, nsq_row)

    return out[:N, :N]


def _rbf_reference(X, bandwidth=None):
    bw = 1.0 if bandwidth is None else float(bandwidth)
    d2 = jnp.sum((X[:, None, :] - X[None, :, :]) ** 2, axis=-1)      # (N, N)
    mults = jnp.asarray(BANDWIDTH_MULTIPLIERS, jnp.float32)
    k = jnp.sum(jnp.exp(-0.5 * d2[None] / ((bw * mults) ** 2)[:, None, None]),
                axis=0)
    return k - 6.0 * jnp.eye(X.shape[0], dtype=jnp.float32)


if __name__ == "__main__":
    # Shapes from the reference module: X.reshape(500, N_input=100).
    N, D = 500, 100
    key = jax.random.PRNGKey(0)
    X = jax.random.normal(key, (N, D), dtype=jnp.float32)

    out = rbf(X)                      # bandwidth=None -> get_bandwidth() == 1
    out = jax.block_until_ready(out)

    ref = _rbf_reference(X)
    assert out.shape == (N, N)
    max_err = float(jnp.max(jnp.abs(out - ref)))
    assert jnp.allclose(out, ref, atol=1e-4, rtol=1e-4), max_err

    print("KERNEL_OK")
</pallas_src>

<mosaic_0001>
module attributes {stable_mosaic.version = 11 : i64} {
  func.func @_rbf_kernel(%arg0: i32, %arg1: i32, %arg2: memref<128x128xf32, #tpu.memory_space<vmem>>, %arg3: memref<128x128xf32, #tpu.memory_space<vmem>>, %arg4: memref<128x1xf32, #tpu.memory_space<vmem>>, %arg5: memref<1x128xf32, #tpu.memory_space<vmem>>, %arg6: memref<128x128xf32, #tpu.memory_space<vmem>>) attributes {dimension_semantics = [#tpu.dimension_semantics<parallel>, #tpu.dimension_semantics<parallel>], iteration_bounds = array<i64: 4, 4>, scalar_prefetch = 0 : i64, scratch_operands = 0 : i64, tpu.core_type = #tpu.core_type<tc>, window_params = [{transform_indices = @transform_0, window_bounds = array<i64: 128, 128>}, {transform_indices = @transform_1, window_bounds = array<i64: 128, 128>}, {transform_indices = @transform_2, window_bounds = array<i64: 128, 1>}, {transform_indices = @transform_3, window_bounds = array<i64: 1, 128>}, {transform_indices = @transform_4, window_bounds = array<i64: 128, 128>}]} {
    %c0 = arith.constant 0 : index
    %c0_0 = arith.constant 0 : index
    %0 = vector.load %arg2[%c0, %c0_0] : memref<128x128xf32, #tpu.memory_space<vmem>>, vector<128x128xf32>
    %c0_1 = arith.constant 0 : index
    %c0_2 = arith.constant 0 : index
    %1 = vector.load %arg3[%c0_1, %c0_2] : memref<128x128xf32, #tpu.memory_space<vmem>>, vector<128x128xf32>
    %cst = arith.constant dense<0.000000e+00> : vector<128x128xf32>
    %2 = tpu.matmul %0, %1, %cst {dimension_numbers = #tpu.dot_dimension_numbers<[1], [1], [0], [0], [0, 0, 1, 0], [], []>} : vector<128x128xf32>, vector<128x128xf32>, vector<128x128xf32> -> vector<128x128xf32>
    %c0_3 = arith.constant 0 : index
    %c0_4 = arith.constant 0 : index
    %3 = vector.load %arg4[%c0_3, %c0_4] : memref<128x1xf32, #tpu.memory_space<vmem>>, vector<128x1xf32>
    %c0_5 = arith.constant 0 : index
    %c0_6 = arith.constant 0 : index
    %4 = vector.load %arg5[%c0_5, %c0_6] : memref<1x128xf32, #tpu.memory_space<vmem>>, vector<1x128xf32>
    %5 = vector.broadcast %3 : vector<128x1xf32> to vector<128x128xf32>
    %6 = vector.broadcast %4 : vector<1x128xf32> to vector<128x128xf32>
    %7 = arith.addf %5, %6 : vector<128x128xf32>
    %cst_7 = arith.constant 2.000000e+00 : f32
    %8 = vector.broadcast %cst_7 : f32 to vector<128x128xf32>
    %9 = arith.mulf %8, %2 : vector<128x128xf32>
    %10 = arith.subf %7, %9 : vector<128x128xf32>
    %cst_8 = arith.constant 0.000000e+00 : f32
    %11 = vector.broadcast %cst_8 : f32 to vector<128x128xf32>
    %12 = arith.maximumf %10, %11 : vector<128x128xf32>
    %cst_9 = arith.constant -5.000000e-01 : f32
    %13 = vector.broadcast %cst_9 : f32 to vector<128x128xf32>
    %14 = arith.mulf %12, %13 : vector<128x128xf32>
    %15 = math.exp %14 : vector<128x128xf32>
    %cst_10 = arith.constant -2.000000e-02 : f32
    %16 = vector.broadcast %cst_10 : f32 to vector<128x128xf32>
    %17 = arith.mulf %12, %16 : vector<128x128xf32>
    %18 = math.exp %17 : vector<128x128xf32>
    %cst_11 = arith.constant -3.125000e-04 : f32
    %19 = vector.broadcast %cst_11 : f32 to vector<128x128xf32>
    %20 = arith.mulf %12, %19 : vector<128x128xf32>
    %21 = math.exp %20 : vector<128x128xf32>
    %22 = arith.mulf %15, %15 : vector<128x128xf32>
    %23 = arith.mulf %22, %22 : vector<128x128xf32>
    %24 = arith.mulf %21, %21 : vector<128x128xf32>
    %25 = arith.mulf %24, %24 : vector<128x128xf32>
    %26 = arith.mulf %25, %25 : vector<128x128xf32>
    %27 = arith.mulf %26, %26 : vector<128x128xf32>
    %28 = arith.addf %15, %23 : vector<128x128xf32>
    %29 = arith.addf %18, %27 : vector<128x128xf32>
    %30 = arith.addf %28, %29 : vector<128x128xf32>
    %31 = arith.addf %25, %21 : vector<128x128xf32>
    %32 = arith.addf %30, %31 : vector<128x128xf32>
    %33 = arith.cmpi eq, %arg0, %arg1 : i32
    %34 = arith.extui %33 : i1 to i32
    %c0_i32 = arith.constant 0 : i32
    %35 = arith.cmpi ne, %34, %c0_i32 : i32
    scf.if %35 {
      %39 = tpu.iota {dimensions = array<i32: 0>} : vector<128x128xi32>
      %40 = tpu.iota {dimensions = array<i32: 1>} : vector<128x128xi32>
      %41 = arith.cmpi eq, %39, %40 : vector<128x128xi32>
      %cst_13 = arith.constant 0.000000e+00 : f32
      %42 = vector.broadcast %cst_13 : f32 to vector<128x128xf32>
      %43 = arith.select %41, %42, %32 : vector<128x128xi1>, vector<128x128xf32>
      %c0_14 = arith.constant 0 : index
      %c0_15 = arith.constant 0 : index
      %44 = vector.load %arg6[%c0_14, %c0_15] : memref<128x128xf32, #tpu.memory_space<vmem>>, vector<128x128xf32>
      tpu.vector_store %arg6[%c0_14, %c0_15], %43 {strides = array<i32>} : memref<128x128xf32, #tpu.memory_space<vmem>>, vector<128x128xf32>,
    } else {
    }
    %36 = arith.cmpi ne, %arg0, %arg1 : i32
    %37 = arith.extui %36 : i1 to i32
    %c0_i32_12 = arith.constant 0 : i32
    %38 = arith.cmpi ne, %37, %c0_i32_12 : i32
    scf.if %38 {
      %c0_13 = arith.constant 0 : index
      %c0_14 = arith.constant 0 : index
      %39 = vector.load %arg6[%c0_13, %c0_14] : memref<128x128xf32, #tpu.memory_space<vmem>>, vector<128x128xf32>
      tpu.vector_store %arg6[%c0_13, %c0_14], %32 {strides = array<i32>} : memref<128x128xf32, #tpu.memory_space<vmem>>, vector<128x128xf32>,
    } else {
    }
    return
  }
  func.func @transform_0(%arg0: i32, %arg1: i32) -> (i32, i32) {
    %c0_i32 = arith.constant 0 : i32
    %c0_i32_0 = arith.constant 0 : i32
    return %arg0, %c0_i32 : i32, i32
  }
  func.func @transform_1(%arg0: i32, %arg1: i32) -> (i32, i32) {
    %c0_i32 = arith.constant 0 : i32
    %c0_i32_0 = arith.constant 0 : i32
    return %arg1, %c0_i32 : i32, i32
  }
  func.func @transform_2(%arg0: i32, %arg1: i32) -> (i32, i32) {
    %c0_i32 = arith.constant 0 : i32
    %c0_i32_0 = arith.constant 0 : i32
    return %arg0, %c0_i32 : i32, i32
  }
  func.func @transform_3(%arg0: i32, %arg1: i32) -> (i32, i32) {
    %c0_i32 = arith.constant 0 : i32
    %c0_i32_0 = arith.constant 0 : i32
    return %c0_i32, %arg1 : i32, i32
  }
  func.func @transform_4(%arg0: i32, %arg1: i32) -> (i32, i32) {
    %c0_i32 = arith.constant 0 : i32
    return %arg0, %arg1 : i32, i32
  }
}

</mosaic_0001>

<bundles_post_ra>
// kernel: tpu_custom_call.1
= control target key start
LH: loop header
LB: loop body
LE: loop exit
PB: predicated region body
PF: predicated region fallthrough
CT: control target
= control target key end

     0   :  { %9 = vsyncpa [#allocation3], 0  ;;  %s2223_s0 = inlined_call_operand.vmem [shape: f32[512,128], index: 0, kind: input, shape index: {}]   ;;  %s2224_s1 = inlined_call_operand.hbm [shape: f32[512,128], index: 1, kind: input, shape index: {}]   ;;  %s2225_s2 = inlined_call_operand.vmem [shape: f32[512,1], index: 2, kind: input, shape index: {}]   ;;  %s2226_s3 = inlined_call_operand.vmem [shape: f32[1,512], index: 3, kind: input, shape index: {}]   ;;  %s2227_s4 = inlined_call_operand.hbm [shape: f32[512,512], index: 4, kind: output, shape index: {}]  }
   0x1   :  { %11 = vsyncpa [#allocation3 + $0x1], 0 }
   0x2   :  { %12 = vsyncpa [#allocation4], 0 }
   0x3   :  { %14 = vsyncpa [#allocation4 + $0x1], 0  ;;  %s1734_s15 = smov 0   ;;  %s1736_s16 = smov 0  }
   0x4   :  { %s1738_s17 = smov 0   ;;  %s1740_s18 = smov 0  }
   0x5   :  { %s1742_s19 = smov 0   ;;  %s1744_s20 = smov 0  }
   0x6   :  { %s1746_s21 = smov 0   ;;  %s1748_s22 = smov 0  }
   0x7   :  { %s1750_s23 = smov 0   ;;  %s1752_s24 = smov 0  }
   0x8   :  { %s1754_s25 = smov 0  }
   0x9 LB: > { %s1180_s26 = sadd.s32 4294967295, %s1699_s25   ;;  %s1181_s27 = sadd.s32 4294967294, %s1699_s25   ;;  %s1699_s25 = sphi %s1754_s25, %s20_s25   ;;  %s1695_s24 = sphi %s1752_s24, %s2252_s24   ;;  %s1691_s23 = sphi %s1750_s23, %s2251_s23   ;;  %s1687_s22 = sphi %s1748_s22, %s2250_s22   ;;  %s1683_s21 = sphi %s1746_s21, %s2249_s21   ;;  %s1679_s20 = sphi %s1744_s20, %s2248_s20   ;;  %s1675_s19 = sphi %s1742_s19, %s2247_s19   ;;  %s1671_s18 = sphi %s1740_s18, %s2246_s18   ;;  %s1667_s17 = sphi %s1738_s17, %s2245_s17   ;;  %s1663_s16 = sphi %s1736_s16, %s2244_s16   ;;  %s1659_s15 = sphi %s1734_s15, %s2243_s15  }
   0xa   : > { %s29_s28 = sadd.s32 1, %s1691_s23  ;;  %s32_s29 = sadd.s32 1, %s1695_s24 }
   0xb   : > { %p30_p0 = scmp.ge.s32.totalorder %s29_s28, 4  ;;  %s65_s30 = sadd.s32 1, %s1679_s20 }
   0xc   : > { %p72_p1 = scmp.ne.s32.totalorder %s1679_s20, %s1675_s19  ;;  %p73_p2 = scmp.eq.s32.totalorder %s1699_s25, 0 }
   0xd   : > { %s2254_s28 = smov (%p30_p0, %s29_s28), 0  ;;  %s2256_s29 = smov (!%p30_p0, %s32_s29), %s1695_s24 }
   0xe   : > { %2231 = sst [smem:[#allocation8_spill]] %s2254_s28  ;;  %s62_s5 = ssub.s32 %s1691_s23, %s2254_s28 }
   0xf   : > { %p1800_p3 = por %p73_p2, %p72_p1  ;;  %p34_p4 = scmp.ge.s32.totalorder %s2256_s29, 4 }
  0x10   : > { %p63_p5 = scmp.eq.s32.totalorder %s62_s5, 0  ;;  %p78_p6 = scmp.ne.s32.totalorder %s1675_s19, %s1671_s18 }
  0x11   : > { %p79_p7 = scmp.eq.s32.totalorder %s1180_s26, 0  ;;  %s2258_s29 = smov (%p34_p4, %s2256_s29), 0 }
  0x12   : > { %2233 = sst [smem:[#allocation9_spill]] %s2258_s29  ;;  %s140_s9 = ssub.s32 %s1695_s24, %s2258_s29 }
  0x13   : > { %s1808_s7 = scalar_select %p63_p5, %s1679_s20, %s65_s30  }
  0x14   : > { %p1810_p8 = por %p79_p7, %p78_p6  ;;  %s142_s10 = sor.u32 %s140_s9, %s62_s5 }
  0x15   : > { %s145_s11 = sadd.s32 1, %s1667_s17  ;;  %p143_p9 = scmp.eq.s32.totalorder %s142_s10, 0 }
  0x16   : > { %p155_p10 = scmp.ne.s32.totalorder %s1667_s17, %s1663_s16  ;;  %p156_p11 = scmp.eq.s32.totalorder %s1180_s26, 15 }
  0x17   : > { %p161_p12 = scmp.ne.s32.totalorder %s1663_s16, %s1659_s15  ;;  %p162_p0 = scmp.eq.s32.totalorder %s1181_s27, 15 }
  0x18   : > { %s1822_s12 = scalar_select %p143_p9, %s1667_s17, %s145_s11  }
  0x19   : > { %p1824_p13 = por %p156_p11, %p155_p10  ;;  %p1353_p1 = scmp.lt.s32.totalorder %s1699_s25, 16 }
  0x1a   : > { %p1829_p2 = por %p162_p0, %p161_p12  ;;  %s191_s18 = sand.u32 1, %s1679_s20  }
  0x1b   : > { %s2235_s13 = scalar_select %p1824_p13, 1, 0 }
  0x1c   : > { %s2236_s14 = scalar_select %p1829_p2, 1, 0 }
  0x1d   : > { %s1184_s30 = sshll.u32 %s191_s18, 7  ;;  %s1203_s5 = sshll.u32 %s1691_s23, 11 }
  0x1e   : > { %s1838_s26 = scalar_lea.hbm %s2224_s1, %s1203_s5  ;;  %s195_s11 = scalar_lea.vmem [#allocation2], %s1184_s30 }
  0x1f   : > { %s202_s29 = sshll.u32 %s195_s11, 4  ;;  %p1844_p4 = pnand %p1353_p1, %p1800_p3  ;;  %s1840_s29 = int_to_ptr.vmem [resolvable:$true] %s202_s29 }
  0x20   : > { %s1849_s28 = scalar_lea.sflag [#allocation3], %s191_s18  ;;  %s1547_s5 = scalar_lea.hbm %s1838_s26, 2048 }
  0x21   : > { %p1548_p6 = scmp.ne.s32.totalorder %s1838_s26, %s1547_s5  ;;  %p1549_p7 = pneg %p1844_p4 }
  0x22   : > { %s1552_s6 = scalar_lea.hbm %s2224_s1, 8192  ;;  %p1553_p3 = scmp.lt.u32.totalorder %s1838_s26, %s2224_s1 }
  0x23   : > { %p1550_p9 = pnand %p1549_p7, %p1548_p6  ;;  %p1554_p11 = scmp.lt.u32.totalorder %s1552_s6, %s1547_s5 }
  0x24   : > { %p1556_p0 = scmp.lt.u32.totalorder %s1547_s5, %s1838_s26 }
  0x25   : > { %p1551_p10 = pneg %p1550_p9  ;;  %p1555_p12 = por %p1554_p11, %p1553_p3 }
  0x27   : > { %p1557_p1 = por %p1556_p0, %p1555_p12 }
  0x29   : > { %p1558_p5 = pnand %p1557_p1, %p1551_p10 }
  0x2b   : > { %1561 = shalt.err (!%p1558_p5)
}
  0x2c   : > { %s1562_s18 = scalar_lea.vmem %s1840_s29, 2048  ;;  %s1701_s30 = smov [#allocation2]  }
  0x2d   : > { %p1563_p6 = scmp.ne.s32.totalorder %s1840_s29, %s1562_s18  ;;  %s1567_s9 = sshll.u32 %s1701_s30, 4  ;;  %s1568_s9 = int_to_ptr.vmem [resolvable:$false] %s1567_s9 }
  0x2e   : > { %s1569_s10 = scalar_lea.vmem %s1568_s9, 4096  ;;  %p1570_p13 = scmp.lt.s32.totalorder %s1840_s29, %s1568_s9 }
  0x2f   : > { %p1565_p9 = pnand %p1563_p6, %p1549_p7  ;;  %p1571_p3 = scmp.lt.s32.totalorder %s1569_s10, %s1562_s18 }
  0x31   : > { %p1566_p2 = pneg %p1565_p9  ;;  %p1572_p11 = por %p1571_p3, %p1570_p13 }
  0x33   : > { %p1573_p12 = pnand %p1572_p11, %p1566_p2 }
  0x35   : > { %1576 = shalt.err (!%p1573_p12)
}
  0x36   : > { %s1702_s5 = smov 128   ;;  %s1703_s6 = smov 8  }
  0x37   : > { %1348 = dma.hbm_to_vmem [thread:$0]  (!%p1844_p4), %s1838_s26, 2048, %s1840_s29, %s1849_s28, %s1702_s5, %s1702_s5, %s1703_s6  }
  0x38   : > { %p225_p5 = scmp.lt.s32.totalorder %s1699_s25, 17  ;;  %p2238_p7 = scmp.ge.s32.totalorder %s1699_s25, 1 }
  0x3a   : > { %p226_p10 = pnand %p2238_p7, %p225_p5 }
  0x3b   : > { %s231_s11 = sand.u32 (!%p226_p10), 1, %s1675_s19  }
  0x3c   : > { %229 = sbr.rel (%p226_p10) target bundleno = 497 (0x1f1), region = 36  ;;  %s1188_s18 = sshll.u32 (!%p226_p10), %s231_s11, 7 }
  0x3d   : > { %s232_s30 = scalar_lea.sflag (!%p226_p10), [#allocation3], %s231_s11  ;;  %s1881_s9 = scalar_lea.vmem (!%p226_p10), [#allocation2], %s1188_s18 }
  0x43   : > { %1650 = dma.done.wait (%p1810_p8), %s232_s30, 2048  }
  0x44   : > { %1652 = vsyncadd (%p1810_p8), %s232_s30, 4294965248  ;;  %s270_s28 = sand.u32 1, %s1663_s16   ;;  %s1190_s29 = sshll.u32 %s1687_s22, 4  ;;  %v1704_v0 = vmov 0   ;;  %v306_v1 = vld [vmem:[%s1881_s9] sm:$0xff]  ;;  %v307_v2 = vld [vmem:[%s1881_s9 + $0x8] sm:$0xff] }
  0x45   : > { %s1891_s26 = sshll.u32 %s270_s28, 7  ;;  %p274_p13 = scmp.lt.s32.totalorder %s1190_s29, 63  ;;  %1450 = vset.pattern.permute.xlu1 %v1704_v0  ;;  %1449 = vset.pattern.permute.xlu0 %v1704_v0  ;;  %v308_v3 = vld [vmem:[%s1881_s9 + $0x10] sm:$0xff]  ;;  %v1293_v4 = vpack.c.bf16 %v307_v2, %v306_v1  ;;  %v309_v5 = vld [vmem:[%s1881_s9 + $0x18] sm:$0xff]  ;;  %v310_v9 = vld [vmem:[%s1881_s9 + $0x20] sm:$0xff] }
  0x46   : > { %v1297_v6 = vpack.c.bf16 %v309_v5, %v308_v3  ;;  %v311_v10 = vld [vmem:[%s1881_s9 + $0x28] sm:$0xff]  ;;  %v312_v15 = vld [vmem:[%s1881_s9 + $0x30] sm:$0xff]  ;;  %v313_v16 = vld [vmem:[%s1881_s9 + $0x38] sm:$0xff]  ;;  %p286_p8 = scmp.lt.s32.totalorder %s1683_s21, 3  ;;  %s2080_s8 = scalar_lea.vmem [#allocation5], %s1891_s26 }
  0x47   : > { %s2260_s29 = smov (!%p274_p13, %s1190_s29), 63  ;;  %1294 = vmatprep.subr.bf16.mxu0 %v1293_v4  ;;  %1325 = vmatprep.subr.bf16.mxu1 %v1293_v4  ;;  %v1301_v11 = vpack.c.bf16 %v311_v10, %v310_v9  ;;  %v1305_v19 = vpack.c.bf16 %v313_v16, %v312_v15  ;;  %v314_v22 = vld [vmem:[%s1881_s9 + $0x40] sm:$0xff]  ;;  %v315_v23 = vld [vmem:[%s1881_s9 + $0x48] sm:$0xff]  ;;  %v316_v29 = vld [vmem:[%s1881_s9 + $0x50] sm:$0xff]  ;;  %p1195_p2 = scmp.ne.s32.totalorder %s1687_s22, %s1683_s21 }
  0x48   : > { %s1191_s27 = sshll.u32 %s2260_s29, 3  ;;  %1296 = vmatpush3.bf16.xpose.msra.mxu0 %v1293_v4  ;;  %1333 = vmatpush3.bf16.xpose.msra.mxu1 %v1293_v4  ;;  %v1309_v26 = vpack.c.bf16 %v315_v23, %v314_v22  ;;  %v317_v30 = vld [vmem:[%s1881_s9 + $0x58] sm:$0xff]  ;;  %v318_v36 = vld [vmem:[%s1881_s9 + $0x60] sm:$0xff]  ;;  %v319_v37 = vld [vmem:[%s1881_s9 + $0x68] sm:$0xff] }
  0x49   : > { %s1900_s5 = scalar_lea.vmem %s2223_s0, %s1191_s27  ;;  %1298 = vmatprep.subr.bf16.mxu0 %v1297_v6  ;;  %1326 = vmatprep.subr.bf16.mxu1 %v1297_v6  ;;  %s1909_s18 = scalar_lea.vmem %s2225_s2, %s1191_s27  ;;  %v1313_v33 = vpack.c.bf16 %v317_v30, %v316_v29  ;;  %v1317_v39 = vpack.c.bf16 %v319_v37, %v318_v36  ;;  %v320_v40 = vld [vmem:[%s1881_s9 + $0x70] sm:$0xff]  ;;  %v321_v41 = vld [vmem:[%s1881_s9 + $0x78] sm:$0xff] }
  0x4a   : > { %v290_v7 = vld [vmem:[%s1900_s5] sm:$0xff]  ;;  %v469_v12 = vld [vmem:[%s1909_s18 + $0x10] sm:$0xff]  ;;  %v470_v14 = vld [vmem:[%s1909_s18 + $0x18] sm:$0xff]  ;;  %v1321_v42 = vpack.c.bf16 %v321_v41, %v320_v40  ;;  %s287_s30 = scalar_select %p286_p8, %s1683_s21, 3 }
  0x4b   : > { %v298_v8 = vld [vmem:[%s1900_s5 + $0x40] sm:$0xff]  ;;  %1269 = vmatprep.mubr.f32.mxu0 %v290_v7  ;;  %496 = vperm.xlu1 %1450, %v469_v12   ;;  %v468_v17 = vld [vmem:[%s1909_s18 + $0x8] sm:$0xff]  ;;  %v474_v21 = vld [vmem:[%s1909_s18 + $0x38] sm:$0xff] }
  0x4c   : > { %1281 = vmatprep.mubr.f32.mxu1 %v298_v8  ;;  %v467_v13 = vld [vmem:[%s1909_s18] sm:$0xff]  ;;  %v472_v18 = vld [vmem:[%s1909_s18 + $0x28] sm:$0xff]  ;;  %v473_v24 = vld [vmem:[%s1909_s18 + $0x30] sm:$0xff]  ;;  %s288_s27 = scalar_lea.vmem %s2226_s3, %s287_s30 }
  0x4d   : > { %486 = vperm.xlu0 %1449, %v467_v13   ;;  %v471_v20 = vld [vmem:[%s1909_s18 + $0x20] sm:$0xff]  ;;  %v476_v25 = vld [vmem:[%s1909_s18 + $0x48] sm:$0xff]  ;;  %v478_v28 = vld [vmem:[%s1909_s18 + $0x58] sm:$0xff] }
  0x4e   : > { %v475_v27 = vld [vmem:[%s1909_s18 + $0x40] sm:$0xff]  ;;  %v477_v31 = vld [vmem:[%s1909_s18 + $0x50] sm:$0xff]  ;;  %v480_v32 = vld [vmem:[%s1909_s18 + $0x68] sm:$0xff] }
  0x4f   : > { %501 = vperm.xlu1 %1450, %v470_v14   ;;  %v479_v34 = vld [vmem:[%s1909_s18 + $0x60] sm:$0xff]  ;;  %v482_v35 = vld [vmem:[%s1909_s18 + $0x78] sm:$0xff]  ;;  %v481_v38 = vld [vmem:[%s1909_s18 + $0x70] sm:$0xff] }
  0x50   : > { %1300 = vmatpush3.bf16.xpose.msra.mxu0 %v1297_v6  ;;  %1334 = vmatpush3.bf16.xpose.msra.mxu1 %v1297_v6  ;;  %v291_v43 = vld [vmem:[%s1900_s5 + $0x8] sm:$0xff]  ;;  %v292_v45 = vld [vmem:[%s1900_s5 + $0x10] sm:$0xff]  ;;  %v293_v47 = vld [vmem:[%s1900_s5 + $0x18] sm:$0xff] }
  0x51   : > { %1302 = vmatprep.subr.bf16.mxu0 %v1301_v11  ;;  %1327 = vmatprep.subr.bf16.mxu1 %v1301_v11  ;;  %v299_v44 = vld [vmem:[%s1900_s5 + $0x48] sm:$0xff]  ;;  %v300_v46 = vld [vmem:[%s1900_s5 + $0x50] sm:$0xff]  ;;  %v301_v48 = vld [vmem:[%s1900_s5 + $0x58] sm:$0xff] }
  0x52   : > { %491 = vperm.xlu0 %1449, %v468_v17   ;;  %v294_v49 = vld [vmem:[%s1900_s5 + $0x20] sm:$0xff]  ;;  %v295_v51 = vld [vmem:[%s1900_s5 + $0x28] sm:$0xff]  ;;  %v296_v53 = vld [vmem:[%s1900_s5 + $0x30] sm:$0xff] }
  0x53   : > { %511 = vperm.xlu1 %1450, %v472_v18   ;;  %v302_v50 = vld [vmem:[%s1900_s5 + $0x60] sm:$0xff]  ;;  %v303_v52 = vld [vmem:[%s1900_s5 + $0x68] sm:$0xff]  ;;  %v304_v54 = vld [vmem:[%s1900_s5 + $0x70] sm:$0xff] }
  0x54   : > { %v297_v55 = vld [vmem:[%s1900_s5 + $0x38] sm:$0xff]  ;;  %v1960_v4 = vld [vmem:[%s288_s27] ss:$0 sm:$0xff] }
  0x55   : > { %v305_v56 = vld [vmem:[%s1900_s5 + $0x78] sm:$0xff] }
  0x56   : > { %506 = vperm.xlu0 %1449, %v471_v20  }
  0x57   : > { %521 = vperm.xlu1 %1450, %v474_v21  }
  0x58   : > { %1304 = vmatpush3.bf16.xpose.msra.mxu0 %v1301_v11  ;;  %1335 = vmatpush3.bf16.xpose.msra.mxu1 %v1301_v11 }
  0x59   : > { %1306 = vmatprep.subr.bf16.mxu0 %v1305_v19  ;;  %1328 = vmatprep.subr.bf16.mxu1 %v1305_v19 }
  0x5a   : > { %516 = vperm.xlu0 %1449, %v473_v24  }
  0x5b   : > { %531 = vperm.xlu1 %1450, %v476_v25  }
  0x5e   : > { %526 = vperm.xlu0 %1449, %v475_v27  }
  0x5f   : > { %541 = vperm.xlu1 %1450, %v478_v28  }
  0x60   : > { %1308 = vmatpush3.bf16.xpose.msra.mxu0 %v1305_v19  ;;  %1336 = vmatpush3.bf16.xpose.msra.mxu1 %v1305_v19 }
  0x61   : > { %1310 = vmatprep.subr.bf16.mxu0 %v1309_v26  ;;  %1329 = vmatprep.subr.bf16.mxu1 %v1309_v26 }
  0x62   : > { %536 = vperm.xlu0 %1449, %v477_v31  }
  0x63   : > { %551 = vperm.xlu1 %1450, %v480_v32  }
  0x66   : > { %546 = vperm.xlu0 %1449, %v479_v34  }
  0x67   : > { %561 = vperm.xlu1 %1450, %v482_v35  }
  0x68   : > { %1312 = vmatpush3.bf16.xpose.msra.mxu0 %v1309_v26  ;;  %1337 = vmatpush3.bf16.xpose.msra.mxu1 %v1309_v26 }
  0x69   : > { %1314 = vmatprep.subr.bf16.mxu0 %v1313_v33  ;;  %1330 = vmatprep.subr.bf16.mxu1 %v1313_v33 }
  0x6a   : > { %556 = vperm.xlu0 %1449, %v481_v38  }
  0x70   : > { %1316 = vmatpush3.bf16.xpose.msra.mxu0 %v1313_v33  ;;  %1338 = vmatpush3.bf16.xpose.msra.mxu1 %v1313_v33 }
  0x71   : > { %1318 = vmatprep.subr.bf16.mxu0 %v1317_v39  ;;  %1331 = vmatprep.subr.bf16.mxu1 %v1317_v39 }
  0x78   : > { %1320 = vmatpush3.bf16.xpose.msra.mxu0 %v1317_v39  ;;  %1339 = vmatpush3.bf16.xpose.msra.mxu1 %v1317_v39 }
  0x79   : > { %1322 = vmatprep.subr.bf16.mxu0 %v1321_v42  ;;  %1332 = vmatprep.subr.bf16.mxu1 %v1321_v42 }
  0x80   : > { %1324 = vmatpush3.bf16.xpose.msra.mxu0 %v1321_v42  ;;  %1340 = vmatpush3.bf16.xpose.msra.mxu1 %v1321_v42 }
  0x87   : > { %1270 = vmatmul.mubr.f32.vlgmr.msra.gmra.mrb[0].mxu0 %v291_v43  ;;  %1282 = vmatmul.mubr.f32.vlgmr.msra.gmra.mrb[0].mxu1 %v299_v44 }
  0x88   : > { %1272 = vmatprep.mubr.f32.mxu0 %v292_v45  ;;  %1284 = vmatprep.mubr.f32.mxu1 %v300_v46 }
  0x8b   : > { %1273 = vmatmul.mubr.f32.gmra.mrb[2].mxu0 %v293_v47  ;;  %1285 = vmatmul.mubr.f32.gmra.mrb[2].mxu1 %v301_v48 }
  0x8c   : > { %1275 = vmatprep.mubr.f32.mxu0 %v294_v49  ;;  %1287 = vmatprep.mubr.f32.mxu1 %v302_v50 }
  0x8f   : > { %1276 = vmatmul.mubr.f32.gmra.mrb[4].mxu0 %v295_v51  ;;  %1288 = vmatmul.mubr.f32.gmra.mrb[4].mxu1 %v303_v52 }
  0x90   : > { %1278 = vmatprep.mubr.f32.mxu0 %v296_v53  ;;  %1290 = vmatprep.mubr.f32.mxu1 %v304_v54 }
  0x93   : > { %1279 = vmatmul.mubr.f32.gmra.mrb[6].mxu0 %v297_v55  ;;  %1291 = vmatmul.mubr.f32.gmra.mrb[6].mxu1 %v305_v56 }
  0xca   : > { %v497_v57 = vpop.permute.xlu1 %496 }
  0xcb   : > { %v1967_v17 = vadd.f32 %v1960_v4, %v497_v57 }
  0xcc   : > { %v487_v58 = vpop.permute.xlu0 %486 }
  0xcd   : > { %v570_v13 = vadd.f32 %v1960_v4, %v487_v58 }
  0xce   : > { %v502_v59 = vpop.permute.xlu1 %501 }
  0xcf   : > { %v573_v18 = vadd.f32 %v1960_v4, %v502_v59 }
  0xd1   : > { %v492_v60 = vpop.permute.xlu0 %491 }
  0xd2   : > { %v512_v61 = vpop.permute.xlu1 %511  ;;  %v571_v7 = vadd.f32 %v1960_v4, %v492_v60 }
  0xd3   : > { %v1971_v23 = vadd.f32 %v1960_v4, %v512_v61 }
  0xd5   : > { %v507_v62 = vpop.permute.xlu0 %506 }
  0xd6   : > { %v1951_v63 = vpop.permute.xlu1 %521  ;;  %v1974_v24 = vadd.f32 %v1960_v4, %v507_v62 }
  0xd9   : > { %v1955_v0 = vpop.permute.xlu0 %516 }
  0xda   : > { %v532_v1 = vpop.permute.xlu1 %531 }
  0xdb   : > { %v579_v8 = vadd.f32 %v1960_v4, %v532_v1 }
  0xdd   : > { %v527_v2 = vpop.permute.xlu0 %526 }
  0xde   : > { %v542_v3 = vpop.permute.xlu1 %541  ;;  %v578_v14 = vadd.f32 %v1960_v4, %v527_v2 }
  0xdf   : > { %v581_v29 = vadd.f32 %v1960_v4, %v542_v3 }
  0xe1   : > { %v537_v19 = vpop.permute.xlu0 %536 }
  0xe2   : > { %v552_v20 = vpop.permute.xlu1 %551  ;;  %v1978_v35 = vadd.f32 %v1960_v4, %v537_v19 }
  0xe3   : > { %v1981_v36 = vadd.f32 %v1960_v4, %v552_v20 }
  0xe5   : > { %v547_v20 = vpop.permute.xlu0 %546 }
 0x15a   : > { %v1271_v5 = vpop.f32.mrb[0].mxu0  ;;  %v1283_v6 = vpop.f32.mrb[0].mxu1 }
 0x15b   : > { %v587_v9 = vmul.f32 2.0, %v1271_v5  ;;  %v595_v10 = vmul.f32 2.0, %v1283_v6  ;;  %v388_v11 = vpop.f32.mrb[1].mxu0  ;;  %v428_v12 = vpop.f32.mrb[1].mxu1 }
 0x15c   : > { %v586_v15 = vmul.f32 2.0, %v388_v11  ;;  %v594_v16 = vmul.f32 2.0, %v428_v12 }
 0x15d   : > { %v603_v21 = vsub.f32 %v571_v7, %v587_v9  ;;  %v611_v22 = vsub.f32 %v579_v8, %v595_v10 }
 0x15e   : > { %v602_v25 = vsub.f32 %v570_v13, %v586_v15  ;;  %v610_v26 = vsub.f32 %v578_v14, %v594_v16  ;;  %v1274_v27 = vpop.f32.mrb[2].mxu0  ;;  %v1286_v28 = vpop.f32.mrb[2].mxu1 }
 0x15f   : > { %v619_v30 = vmax.f32 %v603_v21, 0.0  ;;  %v627_v31 = vmax.f32 %v611_v22, 0.0  ;;  %v589_v32 = vmul.f32 2.0, %v1274_v27  ;;  %v398_v33 = vpop.f32.mrb[3].mxu0  ;;  %v438_v34 = vpop.f32.mrb[3].mxu1  ;;  %v597_v38 = vmul.f32 2.0, %v1286_v28 }
 0x160   : > { %v618_v37 = vmax.f32 %v602_v25, 0.0  ;;  %v626_v46 = vmax.f32 %v610_v26, 0.0  ;;  %v588_v53 = vmul.f32 2.0, %v398_v33  ;;  %v596_v54 = vmul.f32 2.0, %v438_v34 }
 0x161   : > { %v635_v39 = vmul.f32 -0.5, %v619_v30  ;;  %v683_v40 = vmul.f32 -0.02, %v619_v30  ;;  %v731_v41 = vmul.f32 -0.0003125, %v619_v30  ;;  %v643_v42 = vmul.f32 -0.5, %v627_v31 }
 0x162   : > { %v691_v43 = vmul.f32 -0.02, %v627_v31  ;;  %v739_v44 = vmul.f32 -0.0003125, %v627_v31  ;;  %v634_v45 = vmul.f32 -0.5, %v618_v37  ;;  %v605_v50 = vsub.f32 %v573_v18, %v589_v32  ;;  %v1277_v2 = vpop.f32.mrb[4].mxu0 }
 0x163   : > { %v652_v47 = vmul.f32 1.442695, %v635_v39  ;;  %v700_v48 = vmul.f32 1.442695, %v683_v40  ;;  %v748_v49 = vmul.f32 1.442695, %v731_v41  ;;  %v613_v52 = vsub.f32 %v581_v29, %v597_v38 }
 0x164   : > { %v668_v51 = vmul.f32 1.442695, %v643_v42  ;;  %v716_v55 = vmul.f32 1.442695, %v691_v43  ;;  %v682_v56 = vmul.f32 -0.02, %v618_v37  ;;  %v604_v27 = vsub.f32 %v1967_v17, %v588_v53 }
 0x165   : > { %1451 = vpow2.f32 %v652_v47  ;;  %v730_v57 = vmul.f32 -0.0003125, %v618_v37  ;;  %v764_v58 = vmul.f32 1.442695, %v739_v44  ;;  %v650_v59 = vmul.f32 1.442695, %v634_v45 }
 0x166   : > { %1453 = vpow2.f32 %v700_v48  ;;  %v642_v60 = vmul.f32 -0.5, %v626_v46  ;;  %v690_v61 = vmul.f32 -0.02, %v626_v46  ;;  %v738_v62 = vmul.f32 -0.0003125, %v626_v46  ;;  %v1289_v7 = vpop.f32.mrb[4].mxu1 }
 0x167   : > { %1455 = vpow2.f32 %v748_v49  ;;  %v621_v1 = vmax.f32 %v605_v50, 0.0  ;;  %v698_v3 = vmul.f32 1.442695, %v682_v56  ;;  %v746_v5 = vmul.f32 1.442695, %v730_v57  ;;  %v408_v11 = vpop.f32.mrb[5].mxu0 }
 0x168   : > { %1457 = vpow2.f32 %v668_v51  ;;  %v629_v6 = vmax.f32 %v613_v52, 0.0  ;;  %v666_v12 = vmul.f32 1.442695, %v642_v60  ;;  %v448_v15 = vpop.f32.mrb[5].mxu1  ;;  %v714_v16 = vmul.f32 1.442695, %v690_v61 }
 0x169   : > { %1459 = vpow2.f32 %v716_v55  ;;  %v637_v8 = vmul.f32 -0.5, %v621_v1  ;;  %v685_v9 = vmul.f32 -0.02, %v621_v1  ;;  %v733_v10 = vmul.f32 -0.0003125, %v621_v1  ;;  %v1985_v29 = vpop.f32.mrb[6].mxu0 }
 0x16a   : > { %1461 = vpow2.f32 %v764_v58  ;;  %v645_v13 = vmul.f32 -0.5, %v629_v6  ;;  %v693_v14 = vmul.f32 -0.02, %v629_v6  ;;  %v762_v18 = vmul.f32 1.442695, %v738_v62  ;;  %v1987_v30 = vpop.f32.mrb[6].mxu1 }
 0x16b   : > { %1463 = vpow2.f32 %v650_v59  ;;  %v741_v19 = vmul.f32 -0.0003125, %v629_v6  ;;  %v656_v21 = vmul.f32 1.442695, %v637_v8  ;;  %v704_v22 = vmul.f32 1.442695, %v685_v9 }
 0x16c   : > { %1465 = vpow2.f32 %v698_v3  ;;  %v752_v25 = vmul.f32 1.442695, %v733_v10  ;;  %v672_v26 = vmul.f32 1.442695, %v645_v13  ;;  %v612_v28 = vsub.f32 %v1978_v35, %v596_v54  ;;  %v1994_v34 = vpop.f32.mrb[7].mxu0  ;;  %v1996_v37 = vpop.f32.mrb[7].mxu1 }
 0x16d   : > { %1467 = vpow2.f32 %v746_v5  ;;  %v1990_v31 = vadd.f32 %v1960_v4, %v547_v20  ;;  %v720_v32 = vmul.f32 1.442695, %v693_v14  ;;  %v1992_v33 = vmul.f32 2.0, %v1277_v2 }
 0x16e   : > { %1469 = vpow2.f32 %v666_v12  ;;  %v768_v17 = vmul.f32 1.442695, %v741_v19  ;;  %v620_v39 = vmax.f32 %v604_v27, 0.0  ;;  %v1998_v35 = vmul.f32 2.0, %v1289_v7 }
 0x16f   : > { %v1452_v38 = vpop.eup %1451  ;;  %1471 = vpow2.f32 %v714_v16  ;;  %v2000_v42 = vmax.f32 %v612_v28, 0.0  ;;  %v2002_v43 = vmul.f32 2.0, %v408_v11  ;;  %v2004_v47 = vmul.f32 2.0, %v448_v15 }
 0x170   : > { %v1454_v40 = vpop.eup %1453  ;;  %v779_v41 = vmul.f32 %v1452_v38, %v1452_v38  ;;  %1473 = vpow2.f32 %v762_v18  ;;  %v636_v45 = vmul.f32 -0.5, %v620_v39  ;;  %v732_v46 = vmul.f32 -0.0003125, %v620_v39 }
 0x171   : > { %v1456_v44 = vpop.eup %1455  ;;  %1475 = vpow2.f32 %v656_v21  ;;  %v684_v50 = vmul.f32 -0.02, %v620_v39  ;;  %v607_v51 = vsub.f32 %v1971_v23, %v1992_v33  ;;  %v644_v58 = vmul.f32 -0.5, %v2000_v42 }
 0x172   : > { %v1458_v48 = vpop.eup %1457  ;;  %v811_v49 = vmul.f32 %v1456_v44, %v1456_v44  ;;  %1477 = vpow2.f32 %v704_v22  ;;  %v795_v53 = vmul.f32 %v779_v41, %v779_v41  ;;  %v654_v55 = vmul.f32 1.442695, %v636_v45 }
 0x173   : > { %v1460_v52 = vpop.eup %1459  ;;  %v787_v54 = vmul.f32 %v1458_v48, %v1458_v48  ;;  %1479 = vpow2.f32 %v752_v25  ;;  %v615_v59 = vsub.f32 %v1981_v36, %v1998_v35  ;;  %v750_v62 = vmul.f32 1.442695, %v732_v46 }
 0x174   : > { %v1462_v56 = vpop.eup %1461  ;;  %v827_v57 = vmul.f32 %v811_v49, %v811_v49  ;;  %1481 = vpow2.f32 %v672_v26  ;;  %v606_v1 = vsub.f32 %v1974_v24, %v2002_v43  ;;  %v875_v8 = vadd.f32 %v1452_v38, %v795_v53  ;;  %v562_v43 = vpop.permute.xlu1 %561 }
 0x175   : > { %v1464_v60 = vpop.eup %1463  ;;  %v819_v61 = vmul.f32 %v1462_v56, %v1462_v56  ;;  %1483 = vpow2.f32 %v720_v32  ;;  %v803_v5 = vmul.f32 %v787_v54, %v787_v54  ;;  %v702_v10 = vmul.f32 1.442695, %v684_v50 }
 0x176   : > { %v1466_v2 = vpop.eup %1465  ;;  %v843_v3 = vmul.f32 %v827_v57, %v827_v57  ;;  %v778_v6 = vmul.f32 %v1464_v60, %v1464_v60  ;;  %1485 = vpow2.f32 %v768_v17  ;;  %v670_v15 = vmul.f32 1.442695, %v644_v58 }
 0x177   : > { %v1468_v7 = vpop.eup %1467  ;;  %v835_v9 = vmul.f32 %v819_v61, %v819_v61  ;;  %1487 = vpow2.f32 %v654_v55  ;;  %v692_v20 = vmul.f32 -0.02, %v2000_v42  ;;  %v923_v25 = vadd.f32 %v1456_v44, %v827_v57 }
 0x178   : > { %v1470_v11 = vpop.eup %1469  ;;  %v859_v12 = vmul.f32 %v843_v3, %v843_v3  ;;  %v794_v13 = vmul.f32 %v778_v6, %v778_v6  ;;  %v810_v14 = vmul.f32 %v1468_v7, %v1468_v7  ;;  %1489 = vpow2.f32 %v750_v62 }
 0x179   : > { %v1472_v16 = vpop.eup %1471  ;;  %v851_v18 = vmul.f32 %v835_v9, %v835_v9  ;;  %v786_v19 = vmul.f32 %v1470_v11, %v1470_v11  ;;  %v883_v26 = vadd.f32 %v1458_v48, %v803_v5  ;;  %1491 = vpow2.f32 %v702_v10 }
 0x17a   : > { %v1474_v21 = vpop.eup %1473  ;;  %v891_v22 = vadd.f32 %v1454_v40, %v859_v12  ;;  %v826_v27 = vmul.f32 %v810_v14, %v810_v14  ;;  %v931_v45 = vadd.f32 %v1462_v56, %v835_v9  ;;  %v874_v49 = vadd.f32 %v1464_v60, %v794_v13 }
 0x17b   : > { %v1476_v28 = vpop.eup %1475  ;;  %v867_v32 = vmul.f32 %v851_v18, %v851_v18  ;;  %v802_v38 = vmul.f32 %v786_v19, %v786_v19  ;;  %v818_v17 = vmul.f32 %v1474_v21, %v1474_v21  ;;  %1493 = vpow2.f32 %v670_v15 }
 0x17c   : > { %v1478_v39 = vpop.eup %1477  ;;  %v907_v41 = vadd.f32 %v891_v22, %v875_v8  ;;  %v842_v46 = vmul.f32 %v826_v27, %v826_v27  ;;  %v718_v55 = vmul.f32 1.442695, %v692_v20  ;;  %v781_v48 = vmul.f32 %v1476_v28, %v1476_v28 }
 0x17d   : > { %v1480_v50 = vpop.eup %1479  ;;  %v899_v53 = vadd.f32 %v1460_v52, %v867_v32  ;;  %v834_v54 = vmul.f32 %v818_v17, %v818_v17  ;;  %v922_v3 = vadd.f32 %v1468_v7, %v826_v27  ;;  %v882_v6 = vadd.f32 %v1470_v11, %v802_v38 }
 0x17e   : > { %v1482_v58 = vpop.eup %1481  ;;  %v2014_v40 = vadd.f32 %v923_v25, %v907_v41  ;;  %v858_v44 = vmul.f32 %v842_v46, %v842_v46  ;;  %v813_v57 = vmul.f32 %v1480_v50, %v1480_v50  ;;  %v740_v52 = vmul.f32 -0.0003125, %v2000_v42 }
 0x17f   : > { %v1484_v61 = vpop.eup %1483  ;;  %v915_v62 = vadd.f32 %v899_v53, %v883_v26  ;;  %v850_v5 = vmul.f32 %v834_v54, %v834_v54  ;;  %v789_v60 = vmul.f32 %v1482_v58, %v1482_v58  ;;  %1495 = vpow2.f32 %v718_v55 }
 0x180   : > { %v1486_v8 = vpop.eup %1485  ;;  %v890_v56 = vadd.f32 %v1466_v2, %v858_v44  ;;  %v829_v9 = vmul.f32 %v813_v57, %v813_v57  ;;  %v797_v18 = vmul.f32 %v781_v48, %v781_v48  ;;  %v930_v25 = vadd.f32 %v1474_v21, %v834_v54 }
 0x181   : > { %v1488_v10 = vpop.eup %1487  ;;  %v2017_v12 = vadd.f32 %v931_v45, %v915_v62  ;;  %v866_v13 = vmul.f32 %v850_v5, %v850_v5  ;;  %v821_v14 = vmul.f32 %v1486_v8, %v1486_v8  ;;  %v766_v26 = vmul.f32 1.442695, %v740_v52 }
 0x182   : > { %v906_v15 = vadd.f32 %v890_v56, %v874_v49  ;;  %v845_v19 = vmul.f32 %v829_v9, %v829_v9  ;;  %v780_v20 = vmul.f32 %v1488_v10, %v1488_v10  ;;  %v1490_v22 = vpop.eup %1489  ;;  %v805_v32 = vmul.f32 %v789_v60, %v789_v60 }
 0x183   : > { %v898_v7 = vadd.f32 %v1472_v16, %v866_v13  ;;  %v837_v11 = vmul.f32 %v821_v14, %v821_v14  ;;  %v812_v42 = vmul.f32 %v1490_v22, %v1490_v22  ;;  %v1492_v38 = vpop.eup %1491  ;;  %1497 = vpow2.f32 %v766_v26 }
 0x184   : > { %v2019_v2 = vadd.f32 %v922_v3, %v906_v15  ;;  %v861_v27 = vmul.f32 %v845_v19, %v845_v19  ;;  %v796_v45 = vmul.f32 %v780_v20, %v780_v20  ;;  %v877_v46 = vadd.f32 %v1476_v28, %v797_v18 }
 0x185   : > { %v914_v17 = vadd.f32 %v898_v7, %v882_v6  ;;  %v853_v41 = vmul.f32 %v837_v11, %v837_v11  ;;  %v925_v53 = vadd.f32 %v1480_v50, %v829_v9  ;;  %v828_v55 = vmul.f32 %v812_v42, %v812_v42  ;;  %v2021_v44 = vpop.eup %1493 }
 0x186   : > { %v893_v49 = vadd.f32 %v1478_v39, %v861_v27  ;;  %v623_v54 = vmax.f32 %v607_v51, 0.0  ;;  %v631_v48 = vmax.f32 %v615_v59, 0.0  ;;  %v885_v62 = vadd.f32 %v1482_v58, %v805_v32 }
 0x187   : > { %v2023_v16 = vadd.f32 %v930_v25, %v914_v17  ;;  %v869_v21 = vmul.f32 %v853_v41, %v853_v41  ;;  %v933_v3 = vadd.f32 %v1486_v8, %v837_v11  ;;  %v844_v28 = vmul.f32 %v828_v55, %v828_v55 }
 0x188   : > { %v909_v57 = vadd.f32 %v893_v49, %v877_v46  ;;  %v876_v50 = vadd.f32 %v1488_v10, %v796_v45  ;;  %v639_v5 = vmul.f32 -0.5, %v623_v54  ;;  %v735_v6 = vmul.f32 -0.0003125, %v623_v54 }
 0x189   : > { %v901_v39 = vadd.f32 %v1484_v61, %v869_v21  ;;  %v860_v9 = vmul.f32 %v844_v28, %v844_v28  ;;  %v788_v60 = vmul.f32 %v2021_v44, %v2021_v44  ;;  %v647_v23 = vmul.f32 -0.5, %v631_v48  ;;  %v1496_v33 = vpop.eup %1495 }
 0x18a   : > { %v2031_v56 = vadd.f32 %v925_v53, %v909_v57  ;;  %v660_v52 = vmul.f32 1.442695, %v639_v5  ;;  %v687_v36 = vmul.f32 -0.02, %v623_v54  ;;  %v756_v35 = vmul.f32 1.442695, %v735_v6 }
 0x18b   : > { %v917_v51 = vadd.f32 %v901_v39, %v885_v62  ;;  %v892_v59 = vadd.f32 %v1492_v38, %v860_v9  ;;  %v676_v58 = vmul.f32 1.442695, %v647_v23  ;;  %v695_v8 = vmul.f32 -0.02, %v631_v48 }
 0x18c   : > { %v743_v13 = vmul.f32 -0.0003125, %v631_v48  ;;  %1499 = vpow2.f32 %v660_v52  ;;  %v622_v10 = vmax.f32 %v606_v1, 0.0  ;;  %v614_v14 = vsub.f32 %v1990_v31, %v2004_v47  ;;  %v557_v52 = vpop.permute.xlu0 %556 }
 0x18d   : > { %v2035_v61 = vadd.f32 %v933_v3, %v917_v51  ;;  %v577_v15 = vadd.f32 %v1960_v4, %v1951_v63  ;;  %v908_v18 = vadd.f32 %v892_v59, %v876_v50  ;;  %v924_v19 = vadd.f32 %v1490_v22, %v828_v55  ;;  %v1498_v7 = vpop.eup %1497 }
 0x18e   : > { %v772_v20 = vmul.f32 1.442695, %v743_v13  ;;  %v708_v25 = vmul.f32 1.442695, %v687_v36  ;;  %1501 = vpow2.f32 %v756_v35  ;;  %v638_v11 = vmul.f32 -0.5, %v622_v10 }
 0x18f   : > { %v734_v26 = vmul.f32 -0.0003125, %v622_v10  ;;  %v2044_v27 = vadd.f32 %v924_v19, %v908_v18  ;;  %v820_v32 = vmul.f32 %v1498_v7, %v1498_v7  ;;  %1503 = vpow2.f32 %v676_v58 }
 0x190   : > { %v630_v24 = vmax.f32 %v614_v14, 0.0  ;;  %v804_v1 = vmul.f32 %v788_v60, %v788_v60  ;;  %v724_v42 = vmul.f32 1.442695, %v695_v8  ;;  %v658_v31 = vmul.f32 1.442695, %v638_v11 }
 0x191   : > { %v754_v47 = vmul.f32 1.442695, %v734_v26  ;;  %v836_v38 = vmul.f32 %v820_v32, %v820_v32  ;;  %1505 = vpow2.f32 %v772_v20  ;;  %v686_v63 = vmul.f32 -0.02, %v622_v10 }
 0x192   : > { %v646_v22 = vmul.f32 -0.5, %v630_v24  ;;  %1507 = vpow2.f32 %v658_v31  ;;  %v742_v17 = vmul.f32 -0.0003125, %v630_v24  ;;  %v593_v41 = vmul.f32 2.0, %v1985_v29 }
 0x193   : > { %v601_v45 = vmul.f32 2.0, %v1987_v30  ;;  %v585_v46 = vadd.f32 %v1960_v4, %v562_v43  ;;  %v852_v49 = vmul.f32 %v836_v38, %v836_v38  ;;  %1509 = vpow2.f32 %v708_v25 }
 0x194   : > { %v674_v53 = vmul.f32 1.442695, %v646_v22  ;;  %v2051_v55 = vadd.f32 %v1960_v4, %v1955_v0  ;;  %1511 = vpow2.f32 %v754_v47  ;;  %v770_v21 = vmul.f32 1.442695, %v742_v17 }
 0x195   : > { %v609_v54 = vsub.f32 %v577_v15, %v593_v41  ;;  %v868_v48 = vmul.f32 %v852_v49, %v852_v49  ;;  %v694_v57 = vmul.f32 -0.02, %v630_v24  ;;  %v617_v62 = vsub.f32 %v585_v46, %v601_v45 }
 0x196   : > { %1513 = vpow2.f32 %v674_v53  ;;  %v1500_v3 = vpop.eup %1499  ;;  %v884_v29 = vadd.f32 %v2021_v44, %v804_v1  ;;  %v706_v30 = vmul.f32 1.442695, %v686_v63  ;;  %v932_v0 = vadd.f32 %v1498_v7, %v836_v38 }
 0x197   : > { %1515 = vpow2.f32 %v724_v42  ;;  %v625_v28 = vmax.f32 %v609_v54, 0.0  ;;  %v900_v39 = vadd.f32 %v1496_v33, %v868_v48  ;;  %v783_v50 = vmul.f32 %v1500_v3, %v1500_v3 }
 0x198   : > { %1517 = vpow2.f32 %v770_v21  ;;  %v633_v5 = vmax.f32 %v617_v62, 0.0  ;;  %v1502_v6 = vpop.eup %1501  ;;  %v722_v59 = vmul.f32 1.442695, %v694_v57  ;;  %v592_v58 = vmul.f32 2.0, %v1994_v34 }
 0x199   : > { %v641_v9 = vmul.f32 -0.5, %v625_v28  ;;  %v689_v60 = vmul.f32 -0.02, %v625_v28  ;;  %v737_v23 = vmul.f32 -0.0003125, %v625_v28  ;;  %v1504_v51 = vpop.eup %1503  ;;  %v916_v36 = vadd.f32 %v900_v39, %v884_v29 }
 0x19a   : > { %v815_v35 = vmul.f32 %v1502_v6, %v1502_v6  ;;  %v799_v44 = vmul.f32 %v783_v50, %v783_v50  ;;  %1519 = vpow2.f32 %v706_v30  ;;  %v791_v15 = vmul.f32 %v1504_v51, %v1504_v51 }
 0x19b   : > { %v664_v8 = vmul.f32 1.442695, %v641_v9  ;;  %v760_v13 = vmul.f32 1.442695, %v737_v23  ;;  %v1506_v33 = vpop.eup %1505  ;;  %v2055_v10 = vadd.f32 %v932_v0, %v916_v36  ;;  %v649_v18 = vmul.f32 -0.5, %v633_v5 }
 0x19c   : > { %v831_v14 = vmul.f32 %v815_v35, %v815_v35  ;;  %v1508_v19 = vpop.eup %1507  ;;  %v2058_v20 = vadd.f32 %v1960_v4, %v557_v52  ;;  %v823_v7 = vmul.f32 %v1506_v33, %v1506_v33  ;;  %v712_v25 = vmul.f32 1.442695, %v689_v60 }
 0x19d   : > { %1521 = vpow2.f32 %v664_v8  ;;  %v1510_v11 = vpop.eup %1509  ;;  %v608_v34 = vsub.f32 %v2051_v55, %v592_v58  ;;  %v600_v32 = vmul.f32 2.0, %v1996_v37  ;;  %v879_v43 = vadd.f32 %v1500_v3, %v799_v44 }
 0x19e   : > { %v847_v26 = vmul.f32 %v831_v14, %v831_v14  ;;  %1523 = vpow2.f32 %v722_v59  ;;  %v1512_v24 = vpop.eup %1511  ;;  %v839_v1 = vmul.f32 %v823_v7, %v823_v7  ;;  %v782_v42 = vmul.f32 %v1508_v19, %v1508_v19 }
 0x19f   : > { %1525 = vpow2.f32 %v760_v13  ;;  %v807_v38 = vmul.f32 %v791_v15, %v791_v15  ;;  %v814_v4 = vmul.f32 %v1512_v24, %v1512_v24  ;;  %v680_v63 = vmul.f32 1.442695, %v649_v18 }
 0x1a0   : > { %v1514_v31 = vpop.eup %1513  ;;  %v863_v47 = vmul.f32 %v847_v26, %v847_v26  ;;  %v927_v17 = vadd.f32 %v1502_v6, %v831_v14  ;;  %v855_v41 = vmul.f32 %v839_v1, %v839_v1  ;;  %1527 = vpow2.f32 %v712_v25 }
 0x1a1   : > { %v1516_v22 = vpop.eup %1515  ;;  %v697_v45 = vmul.f32 -0.02, %v633_v5  ;;  %v830_v53 = vmul.f32 %v814_v4, %v814_v4  ;;  %v790_v55 = vmul.f32 %v1514_v31, %v1514_v31  ;;  %v745_v37 = vmul.f32 -0.0003125, %v633_v5 }
 0x1a2   : > { %v1518_v46 = vpop.eup %1517  ;;  %v895_v49 = vadd.f32 %v1510_v11, %v863_v47  ;;  %v871_v21 = vmul.f32 %v855_v41, %v855_v41  ;;  %v798_v54 = vmul.f32 %v782_v42, %v782_v42  ;;  %v624_v57 = vmax.f32 %v608_v34, 0.0 }
 0x1a3   : > { %v822_v48 = vmul.f32 %v1518_v46, %v1518_v46  ;;  %v846_v3 = vmul.f32 %v830_v53, %v830_v53  ;;  %1529 = vpow2.f32 %v680_v63  ;;  %v776_v29 = vmul.f32 1.442695, %v745_v37 }
 0x1a4   : > { %v911_v62 = vadd.f32 %v895_v49, %v879_v43  ;;  %v1520_v30 = vpop.eup %1519  ;;  %v887_v28 = vadd.f32 %v1504_v51, %v807_v38  ;;  %v903_v39 = vadd.f32 %v1516_v22, %v871_v21  ;;  %v640_v6 = vmul.f32 -0.5, %v624_v57 }
 0x1a5   : > { %v838_v50 = vmul.f32 %v822_v48, %v822_v48  ;;  %v862_v9 = vmul.f32 %v846_v3, %v846_v3  ;;  %v806_v60 = vmul.f32 %v790_v55, %v790_v55  ;;  %1531 = vpow2.f32 %v776_v29 }
 0x1a6   : > { %v2062_v0 = vadd.f32 %v927_v17, %v911_v62  ;;  %v919_v5 = vadd.f32 %v903_v39, %v887_v28  ;;  %v935_v52 = vadd.f32 %v1506_v33, %v839_v1  ;;  %v662_v35 = vmul.f32 1.442695, %v640_v6 }
 0x1a7   : > { %v1522_v23 = vpop.eup %1521  ;;  %v854_v36 = vmul.f32 %v838_v50, %v838_v50  ;;  %v878_v58 = vadd.f32 %v1508_v19, %v798_v54  ;;  %v894_v44 = vadd.f32 %v1520_v30, %v862_v9  ;;  %v728_v8 = vmul.f32 1.442695, %v697_v45 }
 0x1a8   : > { %v1524_v59 = vpop.eup %1523  ;;  %v736_v13 = vmul.f32 -0.0003125, %v624_v57  ;;  %v2064_v51 = vadd.f32 %v935_v52, %v919_v5  ;;  %v926_v15 = vadd.f32 %v1512_v24, %v830_v53  ;;  %v616_v7 = vsub.f32 %v2058_v20, %v600_v32 }
 0x1a9   : > { %v1526_v14 = vpop.eup %1525  ;;  %v870_v18 = vmul.f32 %v854_v36, %v854_v36  ;;  %v910_v25 = vadd.f32 %v894_v44, %v878_v58  ;;  %v886_v11 = vadd.f32 %v1514_v31, %v806_v60  ;;  %v785_v26 = vmul.f32 %v1522_v23, %v1522_v23 }
 0x1aa   : > { %v817_v34 = vmul.f32 %v1526_v14, %v1526_v14  ;;  %v1528_v43 = vpop.eup %1527  ;;  %1533 = vpow2.f32 %v662_v35  ;;  %v758_v1 = vmul.f32 1.442695, %v736_v13  ;;  %v632_v42 = vmax.f32 %v616_v7, 0.0 }
 0x1ab   : > { %v902_v33 = vadd.f32 %v1524_v59, %v870_v18  ;;  %v2067_v19 = vadd.f32 %v926_v15, %v910_v25  ;;  %v688_v38 = vmul.f32 -0.02, %v624_v57  ;;  %v934_v63 = vadd.f32 %v1518_v46, %v838_v50 }
 0x1ac   : > { %v833_v47 = vmul.f32 %v817_v34, %v817_v34  ;;  %1535 = vpow2.f32 %v758_v1  ;;  %v648_v24 = vmul.f32 -0.5, %v632_v42  ;;  %v801_v17 = vmul.f32 %v785_v26, %v785_v26 }
 0x1ad   : > { %v918_v4 = vadd.f32 %v902_v33, %v886_v11  ;;  %v1530_v22 = vpop.eup %1529  ;;  %1537 = vpow2.f32 %v728_v8  ;;  %v744_v32 = vmul.f32 -0.0003125, %v632_v42  ;;  %v710_v21 = vmul.f32 1.442695, %v688_v38 }
 0x1ae   : > { %v849_v20 = vmul.f32 %v833_v47, %v833_v47  ;;  %v678_v41 = vmul.f32 1.442695, %v648_v24  ;;  %v793_v55 = vmul.f32 %v1530_v22, %v1530_v22  ;;  %v881_v54 = vadd.f32 %v1522_v23, %v801_v17 }
 0x1af   : > { %v2069_v31 = vadd.f32 %v934_v63, %v918_v4  ;;  %v1532_v45 = vpop.eup %1531  ;;  %v774_v53 = vmul.f32 1.442695, %v744_v32  ;;  %v696_v57 = vmul.f32 -0.02, %v632_v42  ;;  %v929_v3 = vadd.f32 %v1526_v14, %v833_v47 }
 0x1b0   : > { %v865_v49 = vmul.f32 %v849_v20, %v849_v20  ;;  %v825_v37 = vmul.f32 %v1532_v45, %v1532_v45  ;;  %1539 = vpow2.f32 %v678_v41  ;;  %v809_v30 = vmul.f32 %v793_v55, %v793_v55 }
 0x1b1   : > { %1541 = vpow2.f32 %v774_v53  ;;  %v726_v9 = vmul.f32 1.442695, %v696_v57  ;;  %v958_v41 = vlaneseq (!%p1195_p2) }
 0x1b2   : > { %v897_v48 = vadd.f32 %v1528_v43, %v865_v49  ;;  %v841_v46 = vmul.f32 %v825_v37, %v825_v37  ;;  %1543 = vpow2.f32 %v710_v21  ;;  %v889_v36 = vadd.f32 %v1530_v22, %v809_v30 }
 0x1b3   : > { %1545 = vpow2.f32 %v726_v9  ;;  %v976_v49 = vand.u32 (!%p1195_p2), 127, %v958_v41 }
 0x1b4   : > { %v913_v62 = vadd.f32 %v897_v48, %v881_v54  ;;  %v1534_v29 = vpop.eup %1533  ;;  %v857_v28 = vmul.f32 %v841_v46, %v841_v46  ;;  %v937_v44 = vadd.f32 %v1532_v45, %v841_v46  ;;  %v959_v45 = vshrl.u32 (!%p1195_p2), %v958_v41, 7 }
 0x1b5   : > { %v784_v5 = vmul.f32 %v1534_v29, %v1534_v29 }
 0x1b6   : > { %v2071_v39 = vadd.f32 %v929_v3, %v913_v62  ;;  %v1536_v50 = vpop.eup %1535  ;;  %v873_v6 = vmul.f32 %v857_v28, %v857_v28  ;;  %vm977_vm0 = vcmp.eq.s32.totalorder (!%p1195_p2), %v959_v45, %v976_v49  ;;  %v960_v53 = vadd.s32 (!%p1195_p2), 8, %v959_v45 }
 0x1b7   : > { %v1538_v60 = vpop.eup %1537  ;;  %v816_v52 = vmul.f32 %v1536_v50, %v1536_v50  ;;  %v800_v8 = vmul.f32 %v784_v5, %v784_v5  ;;  %v961_v55 = vadd.s32 (!%p1195_p2), 16, %v959_v45  ;;  %v962_v37 = vadd.s32 (!%p1195_p2), 24, %v959_v45 }
 0x1b8   : > { %v905_v23 = vadd.f32 %v1538_v60, %v873_v6  ;;  %v993_v21 = vsel (!%p1195_p2), %vm977_vm0, 0.0, %v2019_v2  ;;  %v963_v54 = vadd.s32 (!%p1195_p2), 32, %v959_v45  ;;  %v964_v48 = vadd.s32 (!%p1195_p2), 40, %v959_v45 }
 0x1b9   : > { %v832_v35 = vmul.f32 %v816_v52, %v816_v52  ;;  %v880_v26 = vadd.f32 %v1534_v29, %v800_v8  ;;  %v965_v46 = vadd.s32 (!%p1195_p2), 48, %v959_v45  ;;  %1009 = vst [vmem:[%s2080_s8] sm:$0xff] (!%p1195_p2), %v993_v21  ;;  %vm978_vm1 = vcmp.eq.s32.totalorder (!%p1195_p2), %v960_v53, %v976_v49 }
 0x1ba   : > { %v1540_v59 = vpop.eup %1539  ;;  %v921_v58 = vadd.f32 %v905_v23, %v889_v36  ;;  %vm979_vm2 = vcmp.eq.s32.totalorder (!%p1195_p2), %v961_v55, %v976_v49  ;;  %vm980_vm3 = vcmp.eq.s32.totalorder (!%p1195_p2), %v962_v37, %v976_v49  ;;  %v966_v57 = vadd.s32 (!%p1195_p2), 56, %v959_v45 }
 0x1bb   : > { %v848_v13 = vmul.f32 %v832_v35, %v832_v35  ;;  %v1542_v14 = vpop.eup %1541  ;;  %v792_v7 = vmul.f32 %v1540_v59, %v1540_v59  ;;  %v928_v1 = vadd.f32 %v1536_v50, %v832_v35  ;;  %v994_v62 = vsel (!%p1195_p2), %vm978_vm1, 0.0, %v2014_v40 }
 0x1bc   : > { %v2073_v15 = vadd.f32 %v937_v44, %v921_v58  ;;  %v824_v25 = vmul.f32 %v1542_v14, %v1542_v14  ;;  %v1544_v11 = vpop.eup %1543  ;;  %v995_v3 = vsel (!%p1195_p2), %vm979_vm2, 0.0, %v2044_v27  ;;  %v996_v29 = vsel (!%p1195_p2), %vm980_vm3, 0.0, %v2031_v56  ;;  %1010 = vst [vmem:[%s2080_s8 + $0x8] sm:$0xff] (!%p1195_p2), %v994_v62 }
 0x1bd   : > { %v864_v18 = vmul.f32 %v848_v13, %v848_v13  ;;  %v808_v42 = vmul.f32 %v792_v7, %v792_v7  ;;  %v1546_v63 = vpop.eup %1545  ;;  %vm981_vm4 = vcmp.eq.s32.totalorder (!%p1195_p2), %v963_v54, %v976_v49  ;;  %1011 = vst [vmem:[%s2080_s8 + $0x10] sm:$0xff] (!%p1195_p2), %v995_v3  ;;  %1012 = vst [vmem:[%s2080_s8 + $0x18] sm:$0xff] (!%p1195_p2), %v996_v29  ;;  %v967_v9 = vadd.s32 (!%p1195_p2), 64, %v959_v45 }
 0x1be   : > { %v840_v43 = vmul.f32 %v824_v25, %v824_v25  ;;  %v997_v30 = vsel (!%p1195_p2), %vm981_vm4, 0.0, %v2067_v19  ;;  %vm982_vm5 = vcmp.eq.s32.totalorder (!%p1195_p2), %v964_v48, %v976_v49  ;;  %vm983_vm6 = vcmp.eq.s32.totalorder (!%p1195_p2), %v965_v46, %v976_v49 }
 0x1bf   : > { %v896_v34 = vadd.f32 %v1544_v11, %v864_v18  ;;  %v888_v24 = vadd.f32 %v1540_v59, %v808_v42  ;;  %vm984_vm7 = vcmp.eq.s32.totalorder (!%p1195_p2), %v966_v57, %v976_v49  ;;  %1013 = vst [vmem:[%s2080_s8 + $0x20] sm:$0xff] (!%p1195_p2), %v997_v30  ;;  %v998_v28 = vsel (!%p1195_p2), %vm982_vm5, 0.0, %v2062_v0 }
 0x1c0   : > { %v856_v47 = vmul.f32 %v840_v43, %v840_v43  ;;  %v936_v20 = vadd.f32 %v1542_v14, %v840_v43  ;;  %v1000_v6 = vsel (!%p1195_p2), %vm984_vm7, 0.0, %v2071_v39  ;;  %1014 = vst [vmem:[%s2080_s8 + $0x28] sm:$0xff] (!%p1195_p2), %v998_v28  ;;  %v968_v60 = vadd.s32 (!%p1195_p2), 72, %v959_v45 }
 0x1c1   : > { %v912_v33 = vadd.f32 %v896_v34, %v880_v26  ;;  %1016 = vst [vmem:[%s2080_s8 + $0x38] sm:$0xff] (!%p1195_p2), %v1000_v6  ;;  %v969_v5 = vadd.s32 (!%p1195_p2), 80, %v959_v45  ;;  %v970_v52 = vadd.s32 (!%p1195_p2), 88, %v959_v45  ;;  %v971_v36 = vadd.s32 (!%p1195_p2), 96, %v959_v45 }
 0x1c2   : > { %v872_v4 = vmul.f32 %v856_v47, %v856_v47  ;;  %957 = sbr.rel (%p1195_p2) target bundleno = 460 (0x1cc), region = 44  ;;  %vm985_vm8 = vcmp.eq.s32.totalorder (!%p1195_p2), %v967_v9, %v976_v49  ;;  %v972_v23 = vadd.s32 (!%p1195_p2), 104, %v959_v45  ;;  %v973_v35 = vadd.s32 (!%p1195_p2), 112, %v959_v45 }
 0x1c3   : > { %v2075_v38 = vadd.f32 %v928_v1, %v912_v33  ;;  %v974_v59 = vadd.s32 (!%p1195_p2), 120, %v959_v45  ;;  %v1001_v58 = vsel (!%p1195_p2), %vm985_vm8, 0.0, %v2023_v16  ;;  %vm986_vm9 = vcmp.eq.s32.totalorder (!%p1195_p2), %v968_v60, %v976_v49 }
 0x1c4   : > { %v904_v22 = vadd.f32 %v1546_v63, %v872_v4  ;;  %vm987_vm10 = vcmp.eq.s32.totalorder (!%p1195_p2), %v969_v5, %v976_v49  ;;  %vm988_vm11 = vcmp.eq.s32.totalorder (!%p1195_p2), %v970_v52, %v976_v49  ;;  %1017 = vst [vmem:[%s2080_s8 + $0x40] sm:$0xff] (!%p1195_p2), %v1001_v58  ;;  %v1002_v44 = vsel (!%p1195_p2), %vm986_vm9, 0.0, %v2017_v12 }
 0x1c5   : > { %v999_v50 = vsel (!%p1195_p2), %vm983_vm6, 0.0, %v2075_v38  ;;  %v1003_v8 = vsel (!%p1195_p2), %vm987_vm10, 0.0, %v2055_v10  ;;  %v1004_v13 = vsel (!%p1195_p2), %vm988_vm11, 0.0, %v2035_v61  ;;  %vm989_vm12 = vcmp.eq.s32.totalorder (!%p1195_p2), %v971_v36, %v976_v49  ;;  %1018 = vst [vmem:[%s2080_s8 + $0x48] sm:$0xff] (!%p1195_p2), %v1002_v44 }
 0x1c6   : > { %v920_v17 = vadd.f32 %v904_v22, %v888_v24  ;;  %1015 = vst [vmem:[%s2080_s8 + $0x30] sm:$0xff] (!%p1195_p2), %v999_v50  ;;  %1019 = vst [vmem:[%s2080_s8 + $0x50] sm:$0xff] (!%p1195_p2), %v1003_v8  ;;  %v1005_v14 = vsel (!%p1195_p2), %vm989_vm12, 0.0, %v2069_v31  ;;  %vm990_vm13 = vcmp.eq.s32.totalorder (!%p1195_p2), %v972_v23, %v976_v49  ;;  %vm991_vm14 = vcmp.eq.s32.totalorder (!%p1195_p2), %v973_v35, %v976_v49 }
 0x1c7   : > { %1020 = vst [vmem:[%s2080_s8 + $0x58] sm:$0xff] (!%p1195_p2), %v1004_v13  ;;  %vm992_vm15 = vcmp.eq.s32.totalorder (!%p1195_p2), %v974_v59, %v976_v49  ;;  %1021 = vst [vmem:[%s2080_s8 + $0x60] sm:$0xff] (!%p1195_p2), %v1005_v14  ;;  %v1006_v18 = vsel (!%p1195_p2), %vm990_vm13, 0.0, %v2064_v51 }
 0x1c8   : > { %v2077_v32 = vadd.f32 %v936_v20, %v920_v17  ;;  %v1008_v25 = vsel (!%p1195_p2), %vm992_vm15, 0.0, %v2073_v15  ;;  %1022 = vst [vmem:[%s2080_s8 + $0x68] sm:$0xff] (!%p1195_p2), %v1006_v18 }
 0x1c9   : > { %1024 = vst [vmem:[%s2080_s8 + $0x78] sm:$0xff] %v1008_v25 }
 0x1ca   : > { %v1007_v7 = vsel %vm991_vm14, 0.0, %v2077_v32 }
 0x1cb   : > { %1023 = vst [vmem:[%s2080_s8 + $0x70] sm:$0xff] %v1007_v7 }
 0x1cc PF: > { %p1196_p4 = scmp.eq.s32.totalorder %s1687_s22, %s1683_s21 }
 0x1cd   : > { %1029 = vst [vmem:[%s2080_s8] sm:$0xff] (!%p1196_p4), %v2019_v2  ;;  %1030 = vst [vmem:[%s2080_s8 + $0x8] sm:$0xff] (!%p1196_p4), %v2014_v40 }
 0x1ce   : > { %1028 = sbr.rel (%p1196_p4) target bundleno = 469 (0x1d5), region = 48  ;;  %1031 = vst [vmem:[%s2080_s8 + $0x10] sm:$0xff] (!%p1196_p4), %v2044_v27  ;;  %1032 = vst [vmem:[%s2080_s8 + $0x18] sm:$0xff] (!%p1196_p4), %v2031_v56 }
 0x1cf   : > { %1033 = vst [vmem:[%s2080_s8 + $0x20] sm:$0xff] (!%p1196_p4), %v2067_v19  ;;  %1034 = vst [vmem:[%s2080_s8 + $0x28] sm:$0xff] (!%p1196_p4), %v2062_v0 }
 0x1d0   : > { %1035 = vst [vmem:[%s2080_s8 + $0x30] sm:$0xff] (!%p1196_p4), %v2075_v38  ;;  %1036 = vst [vmem:[%s2080_s8 + $0x38] sm:$0xff] (!%p1196_p4), %v2071_v39 }
 0x1d1   : > { %1037 = vst [vmem:[%s2080_s8 + $0x40] sm:$0xff] (!%p1196_p4), %v2023_v16  ;;  %1038 = vst [vmem:[%s2080_s8 + $0x48] sm:$0xff] (!%p1196_p4), %v2017_v12 }
 0x1d2   : > { %1039 = vst [vmem:[%s2080_s8 + $0x50] sm:$0xff] (!%p1196_p4), %v2055_v10  ;;  %1040 = vst [vmem:[%s2080_s8 + $0x58] sm:$0xff] (!%p1196_p4), %v2035_v61 }
 0x1d3   : > { %1041 = vst [vmem:[%s2080_s8 + $0x60] sm:$0xff] (!%p1196_p4), %v2069_v31  ;;  %1042 = vst [vmem:[%s2080_s8 + $0x68] sm:$0xff] (!%p1196_p4), %v2064_v51 }
 0x1d4   : > { %1043 = vst [vmem:[%s2080_s8 + $0x70] sm:$0xff] (!%p1196_p4), %v2077_v32  ;;  %1044 = vst [vmem:[%s2080_s8 + $0x78] sm:$0xff] (!%p1196_p4), %v2073_v15 }
 0x1d5 PF: > { %s1204_s26 = sshll.u32 %s1687_s22, 6  ;;  %s1061_s5 = sshll.u32 %s2080_s8, 4  ;;  %s2153_s5 = int_to_ptr.vmem [resolvable:$true] %s1061_s5 }
 0x1d6   : > { %s1058_s10 = sadd.s32 %s1683_s21, %s1204_s26  ;;  %s2162_s9 = scalar_lea.sflag [#allocation4], %s270_s28 }
 0x1d7   : > { %s1200_s6 = sshll.u32 %s1058_s10, 7  ;;  %s1577_s29 = scalar_lea.vmem %s2153_s5, 2048 }
 0x1d8   : > { %s2158_s30 = scalar_lea.hbm %s2227_s4, %s1200_s6  ;;  %p1578_p0 = scmp.ne.s32.totalorder %s2153_s5, %s1577_s29 }
 0x1d9   : > { %p2239_p1 = scmp.ne.s32.totalorder %s2235_s13, 0  ;;  %s1705_s21 = smov [#allocation5]  }
 0x1da   : > { %s1581_s22 = sshll.u32 %s1705_s21, 4  ;;  %s1582_s22 = int_to_ptr.vmem [resolvable:$false] %s1581_s22 }
 0x1db   : > { %p1579_p6 = pnand %p1578_p0, %p2239_p1  ;;  %s1583_s27 = scalar_lea.vmem %s1582_s22, 4096 }
 0x1dc   : > { %p1584_p3 = scmp.lt.s32.totalorder %s2153_s5, %s1582_s22  ;;  %p1585_p11 = scmp.lt.s32.totalorder %s1583_s27, %s1577_s29 }
 0x1dd   : > { %p1580_p9 = pneg %p1579_p6 }
 0x1de   : > { %p1586_p12 = por %p1585_p11, %p1584_p3 }
 0x1e0   : > { %p1587_p5 = pnand %p1586_p12, %p1580_p9 }
 0x1e2   : > { %1590 = shalt.err (!%p1587_p5)
}
 0x1e3   : > { %s1591_s28 = scalar_lea.hbm %s2158_s30, 2048  ;;  %s1595_s10 = scalar_lea.hbm %s2227_s4, 32768 }
 0x1e4   : > { %p1592_p7 = scmp.ne.s32.totalorder %s2158_s30, %s1591_s28  ;;  %p1596_p8 = scmp.lt.u32.totalorder %s2158_s30, %s2227_s4 }
 0x1e5   : > { %p1597_p2 = scmp.lt.u32.totalorder %s1595_s10, %s1591_s28  ;;  %p1599_p0 = scmp.lt.u32.totalorder %s1591_s28, %s2158_s30 }
 0x1e6   : > { %p1593_p10 = pnand %p1592_p7, %p2239_p1 }
 0x1e7   : > { %p1598_p4 = por %p1597_p2, %p1596_p8 }
 0x1e8   : > { %p1594_p13 = pneg %p1593_p10 }
 0x1e9   : > { %p1600_p6 = por %p1599_p0, %p1598_p4 }
 0x1eb   : > { %p1601_p9 = pnand %p1600_p6, %p1594_p13 }
 0x1ed   : > { %1604 = shalt.err (!%p1601_p9)
}
 0x1ee   : > { %s1706_s18 = smov 128   ;;  %s1707_s29 = smov 512  }
 0x1ef   : > { %s1708_s21 = smov 8  }
 0x1f0   : > { %1343 = dma.vmem_to_hbm [thread:$0]  (%p2239_p1), %s2153_s5, 2048, %s2158_s30, %s2162_s9, %s1706_s18, %s1707_s29, %s1708_s21  }
 0x1f1 PF: > { %p1354_p3 = scmp.ge.s32.totalorder %s1699_s25, 2  ;;  %s1076_s22 = sand.u32 1, %s1659_s15  }
 0x1f2   : > { %p2240_p11 = scmp.ne.s32.totalorder %s2236_s14, 0  ;;  %s1077_s27 = scalar_lea.sflag [#allocation4], %s1076_s22 }
 0x1f4   : > { %p1350_p12 = pnand %p1354_p3, %p2240_p11 }
 0x1f6   : > { %1654 = dma.done.wait (!%p1350_p12), %s1077_s27, 2048  }
 0x1f7   : > { %1656 = vsyncadd (!%p1350_p12), %s1077_s27, 4294965248  ;;  %s20_s25 = sadd.s32 1, %s1699_s25   ;;  %s2241_s13 = sld [smem:[#allocation8_spill]] }
 0x1f8   : > { %p17_p5 = scmp.ge.s32.totalorder %s20_s25, 18   ;;  %s2242_s5 = sld [smem:[#allocation9_spill]] }
 0x1f9   : > { %s2243_s15 = smov %s1663_s16  ;;  %s2244_s16 = smov %s1667_s17 }
 0x1fa   : > { %s2245_s17 = smov %s1822_s12  ;;  %s2246_s18 = smov %s1675_s19 }
 0x1fb   : > { %s2247_s19 = smov %s1679_s20  ;;  %s2248_s20 = smov %s1808_s7 }
 0x1fc   : > { %s2249_s21 = smov %s1691_s23  ;;  %s2250_s22 = smov %s1695_s24 }
 0x1fd   : > { %s2251_s23 = smov %s2241_s13  ;;  %19 = sbr.rel (!%p17_p5) target bundleno = 9 (0x9), region = 98 }
 0x1fe   : > { %s2252_s24 = smov %s2242_s5 }
 0x204   :  { %1082 = vsyncpa [#allocation3], 1 }
 0x205   :  { %1084 = vsyncpa [#allocation3 + $0x1], 1 }
 0x206   :  { %1085 = vsyncpa [#allocation4], 1 }
 0x207   :  { %1087 = vsyncpa [#allocation4 + $0x1], 1 }

</bundles_post_ra>
